<compile_context>
chip_gen: v7x
topology: tpu7x:2x2x1
jax: 0.10.0
libtpu: 0.0.40
codegen_flags: <defaults>
</compile_context>

<pallas_src>
import functools

import jax
import jax.numpy as jnp
from jax import lax
from jax.experimental import pallas as pl
from jax.experimental.pallas import tpu as pltpu

_LANES = 128
_SUBLANES = 8
_ALIGN = _SUBLANES * _LANES          # one (8,128) f32 tile = 1024 elements
_CHUNK_ROWS = 256                    # rows per in-kernel reduction chunk (32 vregs)
_DEFAULT_TILE_ROWS = 16384           # (16384, 128) f32 = 8 MiB per pipeline buffer
_FAST_PATH_ELEMS = 128 * 1024        # below this, plain XLA beats kernel launch cost


def _cdiv(a, b):
    return (a + b - 1) // b


def _reduce_rows(x_ref, valid_rows):
    """Sum the first `valid_rows` rows of the (tile_rows, 128) block -> (8, 128)."""
    acc = jnp.zeros((_SUBLANES, _LANES), jnp.float32)
    full_chunks = valid_rows // _CHUNK_ROWS                 # static
    tail_rows = valid_rows - full_chunks * _CHUNK_ROWS      # static, multiple of 8

    if full_chunks > 0:
        def body(c, a):
            r0 = pl.multiple_of(c * _CHUNK_ROWS, _CHUNK_ROWS)
            v = x_ref[pl.ds(r0, _CHUNK_ROWS), :].astype(jnp.float32)
            return a + jnp.sum(v.reshape(-1, _SUBLANES, _LANES), axis=0)
        acc = lax.fori_loop(0, full_chunks, body, acc, unroll=2)

    if tail_rows > 0:
        v = x_ref[pl.ds(full_chunks * _CHUNK_ROWS, tail_rows), :].astype(jnp.float32)
        acc = acc + jnp.sum(v.reshape(-1, _SUBLANES, _LANES), axis=0)
    return acc


def _sum_kernel(x_ref, o_ref, comp_ref, *, nblocks, tile_rows, last_rows):
    """Stream (tile_rows, 128) blocks; Kahan-accumulate into resident (8,128) o_ref."""
    i = pl.program_id(0)

    @pl.when(i == 0)
    def _():
        o_ref[...] = jnp.zeros_like(o_ref)
        comp_ref[...] = jnp.zeros_like(comp_ref)

    def kahan_add(tile_sum):
        y = tile_sum - comp_ref[...]
        s = o_ref[...] + y
        comp_ref[...] = (s - o_ref[...]) - y
        o_ref[...] = s

    if last_rows == tile_rows:
        # Blocks divide the array exactly: single unconditional path.
        kahan_add(_reduce_rows(x_ref, tile_rows))
    else:
        @pl.when(i != nblocks - 1)
        def _():
            kahan_add(_reduce_rows(x_ref, tile_rows))

        @pl.when(i == nblocks - 1)
        def _():
            # Ragged last block: statically read only the valid rows.
            kahan_add(_reduce_rows(x_ref, last_rows))


def dummy_model_forward(x, w, b, *, tile_rows=_DEFAULT_TILE_ROWS, force_pallas=False):
    """Pallas equivalent of DummyModel.forward: mean(Linear(1,1)(x)) -> scalar f32.

    x: (N, 1) (any shape works; it is flattened), w: (1, 1), b: (1,).
    """
    n = int(x.size)
    w_s = w.reshape(()).astype(jnp.float32)
    b_s = b.reshape(()).astype(jnp.float32)

    # Small-N fast path: fixed pallas_call launch/pipeline cost dominates.
    if n < _FAST_PATH_ELEMS and not force_pallas:
        return w_s * jnp.mean(x.astype(jnp.float32)) + b_s

    flat = x.reshape(-1)
    pad = (-n) % _ALIGN
    if pad:
        # <= 1023 zero elements (sum-safe); only taken when N isn't tile-aligned.
        flat = jnp.pad(flat, (0, pad))
    rows = (n + pad) // _LANES                 # multiple of 8
    x2 = flat.reshape(rows, _LANES)            # layout-trivial lane-dense view

    tr = max(_SUBLANES, (min(int(tile_rows), rows) // _SUBLANES) * _SUBLANES)
    nblocks = _cdiv(rows, tr)
    last_rows = rows - (nblocks - 1) * tr      # valid rows in the ragged last block

    kernel = functools.partial(
        _sum_kernel, nblocks=nblocks, tile_rows=tr, last_rows=last_rows)

    partials = pl.pallas_call(
        kernel,
        out_shape=jax.ShapeDtypeStruct((_SUBLANES, _LANES), jnp.float32),
        grid_spec=pltpu.PrefetchScalarGridSpec(
            num_scalar_prefetch=0,
            grid=(nblocks,),
            in_specs=[pl.BlockSpec((tr, _LANES), lambda i: (i, 0))],
            out_specs=pl.BlockSpec((_SUBLANES, _LANES), lambda i: (0, 0)),
            scratch_shapes=[pltpu.VMEM((_SUBLANES, _LANES), jnp.float32)],
        ),
        compiler_params=pltpu.CompilerParams(
            dimension_semantics=("arbitrary",),
            vmem_limit_bytes=40 * 1024 * 1024,
        ),
    )(x2)

    # Tiny epilogue: fold the (8,128) partials, then w * mean(x) + b.
    total = jnp.sum(partials, dtype=jnp.float32)
    return w_s * (total / jnp.float32(n)) + b_s


if __name__ == "__main__":
    key = jax.random.PRNGKey(0)
    kx, kw, kb = jax.random.split(key, 3)

    # Shapes implied by the module: batch N, in_features=1.
    N = 8
    x = jax.random.normal(kx, (N, 1), dtype=jnp.float32)
    # Deterministic "Linear(1,1)" parameters (uniform(-1,1), like torch's init range).
    w = jax.random.uniform(kw, (1, 1), dtype=jnp.float32, minval=-1.0, maxval=1.0)
    b = jax.random.uniform(kb, (1,), dtype=jnp.float32, minval=-1.0, maxval=1.0)

    def reference(xv):
        return jnp.mean(xv @ w.T + b)

    # 1) Tiny batch through the Pallas path (single-block, tail-only reduction).
    out_small = jax.block_until_ready(dummy_model_forward(x, w, b, force_pallas=True))
    ref_small = reference(x)
    assert jnp.allclose(out_small, ref_small, rtol=1e-5, atol=1e-6), (out_small, ref_small)

    # 2) Plain-XLA small-N fast path agrees.
    out_fast = jax.block_until_ready(dummy_model_forward(x, w, b))
    assert jnp.allclose(out_fast, ref_small, rtol=1e-5, atol=1e-6), (out_fast, ref_small)

    # 3) Larger, non-aligned batch exercising the multi-block streaming path:
    #    alignment padding, chunked fori_loop reduction, ragged last block and
    #    Kahan accumulation across blocks.
    N_big = 131_149
    x_big = jax.random.normal(jax.random.PRNGKey(1), (N_big, 1), dtype=jnp.float32)
    out_big = jax.block_until_ready(
        dummy_model_forward(x_big, w, b, tile_rows=640, force_pallas=True))
    ref_big = reference(x_big)
    assert jnp.allclose(out_big, ref_big, rtol=1e-5, atol=1e-5), (out_big, ref_big)

    print("KERNEL_OK")
</pallas_src>

<mosaic_0001>
module attributes {stable_mosaic.version = 11 : i64} {
  func.func @_sum_kernel(%arg0: i32, %arg1: memref<8x128xf32, #tpu.memory_space<vmem>>, %arg2: memref<8x128xf32, #tpu.memory_space<vmem>>, %arg3: memref<8x128xf32, #tpu.memory_space<vmem>>) attributes {dimension_semantics = [#tpu.dimension_semantics<arbitrary>], iteration_bounds = array<i64: 1>, scalar_prefetch = 0 : i64, scratch_operands = 1 : i64, tpu.core_type = #tpu.core_type<tc>, window_params = [{transform_indices = @transform_0, window_bounds = array<i64: 8, 128>}, {pipeline_mode = #tpu.pipeline_mode<synchronous>, transform_indices = @transform_1, window_bounds = array<i64: 8, 128>}]} {
    %c0_i32 = arith.constant 0 : i32
    %0 = arith.cmpi eq, %arg0, %c0_i32 : i32
    %1 = arith.extui %0 : i1 to i32
    %c0_i32_0 = arith.constant 0 : i32
    %2 = arith.cmpi ne, %1, %c0_i32_0 : i32
    scf.if %2 {
      %cst_13 = arith.constant 0.000000e+00 : f32
      %17 = vector.broadcast %cst_13 : f32 to vector<8x128xf32>
      %c0_14 = arith.constant 0 : index
      %c0_15 = arith.constant 0 : index
      %18 = vector.load %arg2[%c0_14, %c0_15] : memref<8x128xf32, #tpu.memory_space<vmem>>, vector<8x128xf32>
      tpu.vector_store %arg2[%c0_14, %c0_15], %17 {strides = array<i32>} : memref<8x128xf32, #tpu.memory_space<vmem>>, vector<8x128xf32>,
      %cst_16 = arith.constant 0.000000e+00 : f32
      %19 = vector.broadcast %cst_16 : f32 to vector<8x128xf32>
      %c0_17 = arith.constant 0 : index
      %c0_18 = arith.constant 0 : index
      %20 = vector.load %arg3[%c0_17, %c0_18] : memref<8x128xf32, #tpu.memory_space<vmem>>, vector<8x128xf32>
      tpu.vector_store %arg3[%c0_17, %c0_18], %19 {strides = array<i32>} : memref<8x128xf32, #tpu.memory_space<vmem>>, vector<8x128xf32>,
    } else {
    }
    %cst = arith.constant 0.000000e+00 : f32
    %3 = vector.broadcast %cst : f32 to vector<8x128xf32>
    %c0 = arith.constant 0 : index
    %c0_1 = arith.constant 0 : index
    %4 = vector.load %arg1[%c0, %c0_1] : memref<8x128xf32, #tpu.memory_space<vmem>>, vector<8x128xf32>
    %5 = vector.shape_cast %4 : vector<8x128xf32> to vector<1x8x128xf32>
    %cst_2 = arith.constant dense<0.000000e+00> : vector<8x128xf32>
    %6 = vector.multi_reduction <add>, %5, %cst_2 [0] : vector<1x8x128xf32> to vector<8x128xf32>
    %7 = arith.addf %3, %6 : vector<8x128xf32>
    %c0_3 = arith.constant 0 : index
    %c0_4 = arith.constant 0 : index
    %8 = vector.load %arg3[%c0_3, %c0_4] : memref<8x128xf32, #tpu.memory_space<vmem>>, vector<8x128xf32>
    %9 = arith.subf %7, %8 : vector<8x128xf32>
    %c0_5 = arith.constant 0 : index
    %c0_6 = arith.constant 0 : index
    %10 = vector.load %arg2[%c0_5, %c0_6] : memref<8x128xf32, #tpu.memory_space<vmem>>, vector<8x128xf32>
    %11 = arith.addf %10, %9 : vector<8x128xf32>
    %c0_7 = arith.constant 0 : index
    %c0_8 = arith.constant 0 : index
    %12 = vector.load %arg2[%c0_7, %c0_8] : memref<8x128xf32, #tpu.memory_space<vmem>>, vector<8x128xf32>
    %13 = arith.subf %11, %12 : vector<8x128xf32>
    %14 = arith.subf %13, %9 : vector<8x128xf32>
    %c0_9 = arith.constant 0 : index
    %c0_10 = arith.constant 0 : index
    %15 = vector.load %arg3[%c0_9, %c0_10] : memref<8x128xf32, #tpu.memory_space<vmem>>, vector<8x128xf32>
    tpu.vector_store %arg3[%c0_9, %c0_10], %14 {strides = array<i32>} : memref<8x128xf32, #tpu.memory_space<vmem>>, vector<8x128xf32>,
    %c0_11 = arith.constant 0 : index
    %c0_12 = arith.constant 0 : index
    %16 = vector.load %arg2[%c0_11, %c0_12] : memref<8x128xf32, #tpu.memory_space<vmem>>, vector<8x128xf32>
    tpu.vector_store %arg2[%c0_11, %c0_12], %11 {strides = array<i32>} : memref<8x128xf32, #tpu.memory_space<vmem>>, vector<8x128xf32>,
    return
  }
  func.func @transform_0(%arg0: i32) -> (i32, i32) {
    %c0_i32 = arith.constant 0 : i32
    %c0_i32_0 = arith.constant 0 : i32
    return %arg0, %c0_i32 : i32, i32
  }
  func.func @transform_1(%arg0: i32) -> (i32, i32) {
    %c0_i32 = arith.constant 0 : i32
    %c0_i32_0 = arith.constant 0 : i32
    %c0_i32_1 = arith.constant 0 : i32
    return %c0_i32, %c0_i32_0 : i32, i32
  }
}

</mosaic_0001>

<bundles_post_ra>
// kernel: tpu_custom_call.1
= control target key start
LH: loop header
LB: loop body
LE: loop exit
PB: predicated region body
PF: predicated region fallthrough
CT: control target
= control target key end

     0   :  { %6 = vsyncpa [#allocation4], 0  ;;  %s140_s0 = inlined_call_operand.hbm [shape: f32[8,128], index: 0, kind: input, shape index: {}]   ;;  %s141_s1 = inlined_call_operand.hbm [shape: f32[8,128], index: 1, kind: output, shape index: {}]  }
   0x1   :  { %7 = vsyncpa [#allocation5], 0  ;;  %s104_s6 = smov [#allocation3]   ;;  %s56_s10 = scalar_lea.hbm %s140_s0, 128 }
   0x2   :  { %s14_s7 = sshll.u32 %s104_s6, 4  ;;  %p57_p0 = scmp.ne.s32.totalorder %s140_s0, %s56_s10  ;;  %s15_s7 = int_to_ptr.vmem [resolvable:$true] %s14_s7 }
   0x3   :  { %p60_p1 = scmp.lt.u32.totalorder %s56_s10, %s140_s0 }
   0x5   :  { %p62_p2 = pnand %p60_p1, %p57_p0 }
   0x7   :  { %65 = shalt.err (!%p62_p2)
}
   0x8   :  { %s66_s15 = scalar_lea.vmem %s15_s7, 128  ;;  %p71_p4 = scmp.lt.s32.totalorder %s15_s7, %s15_s7 }
   0x9   :  { %p67_p3 = scmp.ne.s32.totalorder %s15_s7, %s66_s15  ;;  %p72_p5 = scmp.lt.s32.totalorder %s66_s15, %s66_s15 }
   0xb   :  { %p73_p6 = por %p72_p5, %p71_p4 }
   0xd   :  { %p74_p7 = pnand %p73_p6, %p67_p3 }
   0xf   :  { %77 = shalt.err (!%p74_p7)
}
  0x10   :  { %17 = dma.hbm_to_vmem [thread:$0]  %s140_s0, 128, %s15_s7, [#allocation4]  }
  0x11   :  { %100 = dma.done.wait [#allocation4], 128  }
  0x12   :  { %101 = vsyncadd [#allocation4], 4294967168  ;;  %s105_s18 = smov [#allocation6]   ;;  %v27_v0 = vld [vmem:[#allocation3] sm:$0xff] }
  0x13   :  { %s44_s19 = sshll.u32 %s105_s18, 4  ;;  %37 = vst [vmem:[#allocation6] sm:$0xff] %v27_v0  ;;  %s45_s19 = int_to_ptr.vmem [resolvable:$true] %s44_s19 }
  0x14   :  { %s78_s20 = scalar_lea.vmem %s45_s19, 128  ;;  %p83_p9 = scmp.lt.s32.totalorder %s45_s19, %s45_s19 }
  0x15   :  { %p79_p8 = scmp.ne.s32.totalorder %s45_s19, %s78_s20  ;;  %p84_p10 = scmp.lt.s32.totalorder %s78_s20, %s78_s20 }
  0x17   :  { %p85_p11 = por %p84_p10, %p83_p9 }
  0x19   :  { %p86_p12 = pnand %p85_p11, %p79_p8 }
  0x1b   :  { %89 = shalt.err (!%p86_p12)
}
  0x1c   :  { %s90_s23 = scalar_lea.hbm %s141_s1, 128 }
  0x1d   :  { %p91_p13 = scmp.ne.s32.totalorder %s141_s1, %s90_s23  ;;  %p94_p0 = scmp.lt.u32.totalorder %s90_s23, %s141_s1 }
  0x1f   :  { %p96_p1 = pnand %p94_p0, %p91_p13 }
  0x21   :  { %99 = shalt.err (!%p96_p1)
}
  0x22   :  { %47 = dma.vmem_to_hbm [thread:$0]  %s45_s19, 128, %s141_s1, [#allocation5]  }
  0x23   :  { %102 = dma.done.wait [#allocation5], 128  }
  0x24   :  { %103 = vsyncadd [#allocation5], 4294967168 }
  0x25   :  { %51 = vsyncpa [#allocation4], 1 }
  0x26   :  { %52 = vsyncpa [#allocation5], 1 }

</bundles_post_ra>
